<compile_context>
chip_gen: v6e
topology: v6e:2x2x1
jax: 0.10.0
libtpu: 0.0.40
codegen_flags: <defaults>
</compile_context>

<pallas_src>
import functools

import jax
import jax.numpy as jnp
from jax.experimental import pallas as pl
from jax.experimental.pallas import tpu as pltpu


def _round_up(n, m):
    return ((n + m - 1) // m) * m


def mlp_kernel(x_ref, w1_ref, b1_ref, w2_ref, b2_ref, out_ref):
    # Layer 1: bf16 operands on the MXU, f32 accumulation; bias + ReLU in f32.
    h = jnp.dot(x_ref[...], w1_ref[...], preferred_element_type=jnp.float32)
    h = jnp.maximum(h + b1_ref[...], 0.0)
    # TODO(synk): nn.Dropout is identity in eval mode; training-mode dropout would use
    # pltpu.prng_seed / pltpu.prng_random_bits to build the mask.
    o = jnp.dot(h.astype(jnp.bfloat16), w2_ref[...], preferred_element_type=jnp.float32)
    out_ref[...] = (o + b2_ref[...]).astype(out_ref.dtype)


@functools.partial(jax.jit, static_argnames=("batch_tile",))
def simple_classifier_forward(x, params, batch_tile=128):
    """weight_norm(dim=None): W = g * V / ||V||_F (scalar g). Normalization is cheap
    parameter glue in plain JAX; the matmul/ReLU hot path runs in the Pallas kernel."""
    v1, g1, b1 = params["v1"], params["g1"], params["b1"]   # v1: [in, hid]
    v2, g2, b2 = params["v2"], params["g2"], params["b2"]   # v2: [hid, out]

    w1 = (g1 / jnp.sqrt(jnp.sum(v1 * v1))) * v1              # [in, hid] f32
    w2 = (g2 / jnp.sqrt(jnp.sum(v2 * v2))) * v2              # [hid, out] f32

    B, in_dim = x.shape
    hid_dim = w1.shape[1]
    out_dim = w2.shape[1]

    # Zero-pad feature dims to lane-dense multiples of 128 and the batch to the tile.
    in_pd = _round_up(in_dim, 128)
    hid_pd = _round_up(hid_dim, 128)
    out_pd = _round_up(out_dim, 128)
    tb = batch_tile
    b_pd = _round_up(B, tb)

    x_p = jnp.zeros((b_pd, in_pd), jnp.bfloat16).at[:B, :in_dim].set(
        x.astype(jnp.bfloat16))
    w1_p = jnp.zeros((in_pd, hid_pd), jnp.bfloat16).at[:in_dim, :hid_dim].set(
        w1.astype(jnp.bfloat16))
    w2_p = jnp.zeros((hid_pd, out_pd), jnp.bfloat16).at[:hid_dim, :out_dim].set(
        w2.astype(jnp.bfloat16))
    b1_p = jnp.zeros((1, hid_pd), jnp.float32).at[0, :hid_dim].set(b1)
    b2_p = jnp.zeros((1, out_pd), jnp.float32).at[0, :out_dim].set(b2)

    grid = (pl.cdiv(b_pd, tb),)
    logits_p = pl.pallas_call(
        mlp_kernel,
        out_shape=jax.ShapeDtypeStruct((b_pd, out_pd), jnp.float32),
        grid=grid,
        in_specs=[
            pl.BlockSpec((tb, in_pd), lambda i: (i, 0)),        # streamed per batch tile
            pl.BlockSpec((in_pd, hid_pd), lambda i: (0, 0)),    # VMEM-resident weights
            pl.BlockSpec((1, hid_pd), lambda i: (0, 0)),
            pl.BlockSpec((hid_pd, out_pd), lambda i: (0, 0)),
            pl.BlockSpec((1, out_pd), lambda i: (0, 0)),
        ],
        out_specs=pl.BlockSpec((tb, out_pd), lambda i: (i, 0)),
        compiler_params=pltpu.CompilerParams(
            dimension_semantics=("parallel",),
        ),
    )(x_p, w1_p, b1_p, w2_p, b2_p)

    return logits_p[:B, :out_dim]


def init_params(key, in_dim, hid_dim, out_dim):
    k1, k2, k3, k4 = jax.random.split(key, 4)
    # v stored pre-transposed: v1 [in, hid], v2 [hid, out]. g init = ||v||_F
    # (PyTorch weight_norm init); Frobenius norm is transpose-invariant.
    v1 = jax.random.normal(k1, (in_dim, hid_dim), jnp.float32) * 0.05
    v2 = jax.random.normal(k2, (hid_dim, out_dim), jnp.float32) * 0.05
    b1 = jax.random.normal(k3, (hid_dim,), jnp.float32) * 0.01
    b2 = jax.random.normal(k4, (out_dim,), jnp.float32) * 0.01
    g1 = jnp.sqrt(jnp.sum(v1 * v1))
    g2 = jnp.sqrt(jnp.sum(v2 * v2))
    return {"v1": v1, "g1": g1, "b1": b1, "v2": v2, "g2": g2, "b2": b2}


def reference_forward(x, params):
    v1, g1, b1 = params["v1"], params["g1"], params["b1"]
    v2, g2, b2 = params["v2"], params["g2"], params["b2"]
    w1 = (g1 / jnp.sqrt(jnp.sum(v1 * v1))) * v1   # [in, hid]
    w2 = (g2 / jnp.sqrt(jnp.sum(v2 * v2))) * v2   # [hid, out]
    h = jnp.maximum(x @ w1 + b1, 0.0)
    return h @ w2 + b2


if __name__ == "__main__":
    B, in_dim, hid_dim, out_dim = 8, 32, 64, 16
    key = jax.random.PRNGKey(0)
    kx, kp = jax.random.split(key)
    x = jax.random.normal(kx, (B, in_dim), jnp.float32)
    params = init_params(kp, in_dim, hid_dim, out_dim)

    logits = simple_classifier_forward(x, params)
    logits = jax.block_until_ready(logits)

    ref = reference_forward(x, params)
    assert logits.shape == (B, out_dim)
    # bf16 MXU operands with f32 accumulation vs pure-f32 reference.
    assert jnp.allclose(logits, ref, atol=2e-2, rtol=2e-2)

    print("KERNEL_OK")
</pallas_src>

<mosaic_0001>
module attributes {stable_mosaic.version = 11 : i64} {
  func.func @mlp_kernel(%arg0: i32, %arg1: memref<128x128xbf16, #tpu.memory_space<vmem>>, %arg2: memref<128x128xbf16, #tpu.memory_space<vmem>>, %arg3: memref<1x128xf32, #tpu.memory_space<vmem>>, %arg4: memref<128x128xbf16, #tpu.memory_space<vmem>>, %arg5: memref<1x128xf32, #tpu.memory_space<vmem>>, %arg6: memref<128x128xf32, #tpu.memory_space<vmem>>) attributes {dimension_semantics = [#tpu.dimension_semantics<parallel>], iteration_bounds = array<i64: 1>, scalar_prefetch = 0 : i64, scratch_operands = 0 : i64, tpu.core_type = #tpu.core_type<tc>, window_params = [{transform_indices = @transform_0, window_bounds = array<i64: 128, 128>}, {pipeline_mode = #tpu.pipeline_mode<synchronous>, transform_indices = @transform_1, window_bounds = array<i64: 128, 128>}, {pipeline_mode = #tpu.pipeline_mode<synchronous>, transform_indices = @transform_2, window_bounds = array<i64: 1, 128>}, {pipeline_mode = #tpu.pipeline_mode<synchronous>, transform_indices = @transform_3, window_bounds = array<i64: 128, 128>}, {pipeline_mode = #tpu.pipeline_mode<synchronous>, transform_indices = @transform_4, window_bounds = array<i64: 1, 128>}, {transform_indices = @transform_5, window_bounds = array<i64: 128, 128>}]} {
    %c0 = arith.constant 0 : index
    %c0_0 = arith.constant 0 : index
    %0 = vector.load %arg1[%c0, %c0_0] : memref<128x128xbf16, #tpu.memory_space<vmem>>, vector<128x128xbf16>
    %c0_1 = arith.constant 0 : index
    %c0_2 = arith.constant 0 : index
    %1 = vector.load %arg2[%c0_1, %c0_2] : memref<128x128xbf16, #tpu.memory_space<vmem>>, vector<128x128xbf16>
    %cst = arith.constant dense<0.000000e+00> : vector<128x128xf32>
    %2 = tpu.matmul %0, %1, %cst {dimension_numbers = #tpu.dot_dimension_numbers<[1], [0], [0], [1], [0, 0, 1, 1], [], []>} : vector<128x128xbf16>, vector<128x128xbf16>, vector<128x128xf32> -> vector<128x128xf32>
    %c0_3 = arith.constant 0 : index
    %c0_4 = arith.constant 0 : index
    %3 = vector.load %arg3[%c0_3, %c0_4] : memref<1x128xf32, #tpu.memory_space<vmem>>, vector<1x128xf32>
    %4 = vector.broadcast %3 : vector<1x128xf32> to vector<128x128xf32>
    %5 = arith.addf %2, %4 : vector<128x128xf32>
    %cst_5 = arith.constant 0.000000e+00 : f32
    %6 = vector.broadcast %cst_5 : f32 to vector<128x128xf32>
    %7 = arith.maximumf %5, %6 : vector<128x128xf32>
    %8 = arith.truncf %7 : vector<128x128xf32> to vector<128x128xbf16>
    %c0_6 = arith.constant 0 : index
    %c0_7 = arith.constant 0 : index
    %9 = vector.load %arg4[%c0_6, %c0_7] : memref<128x128xbf16, #tpu.memory_space<vmem>>, vector<128x128xbf16>
    %cst_8 = arith.constant dense<0.000000e+00> : vector<128x128xf32>
    %10 = tpu.matmul %8, %9, %cst_8 {dimension_numbers = #tpu.dot_dimension_numbers<[1], [0], [0], [1], [0, 0, 1, 1], [], []>} : vector<128x128xbf16>, vector<128x128xbf16>, vector<128x128xf32> -> vector<128x128xf32>
    %c0_9 = arith.constant 0 : index
    %c0_10 = arith.constant 0 : index
    %11 = vector.load %arg5[%c0_9, %c0_10] : memref<1x128xf32, #tpu.memory_space<vmem>>, vector<1x128xf32>
    %12 = vector.broadcast %11 : vector<1x128xf32> to vector<128x128xf32>
    %13 = arith.addf %10, %12 : vector<128x128xf32>
    %c0_11 = arith.constant 0 : index
    %c0_12 = arith.constant 0 : index
    %14 = vector.load %arg6[%c0_11, %c0_12] : memref<128x128xf32, #tpu.memory_space<vmem>>, vector<128x128xf32>
    tpu.vector_store %arg6[%c0_11, %c0_12], %13 {strides = array<i32>} : memref<128x128xf32, #tpu.memory_space<vmem>>, vector<128x128xf32>,
    return
  }
  func.func @transform_0(%arg0: i32) -> (i32, i32) {
    %c0_i32 = arith.constant 0 : i32
    %c0_i32_0 = arith.constant 0 : i32
    return %arg0, %c0_i32 : i32, i32
  }
  func.func @transform_1(%arg0: i32) -> (i32, i32) {
    %c0_i32 = arith.constant 0 : i32
    %c0_i32_0 = arith.constant 0 : i32
    %c0_i32_1 = arith.constant 0 : i32
    return %c0_i32, %c0_i32_0 : i32, i32
  }
  func.func @transform_2(%arg0: i32) -> (i32, i32) {
    %c0_i32 = arith.constant 0 : i32
    %c0_i32_0 = arith.constant 0 : i32
    %c0_i32_1 = arith.constant 0 : i32
    return %c0_i32, %c0_i32_0 : i32, i32
  }
  func.func @transform_3(%arg0: i32) -> (i32, i32) {
    %c0_i32 = arith.constant 0 : i32
    %c0_i32_0 = arith.constant 0 : i32
    %c0_i32_1 = arith.constant 0 : i32
    return %c0_i32, %c0_i32_0 : i32, i32
  }
  func.func @transform_4(%arg0: i32) -> (i32, i32) {
    %c0_i32 = arith.constant 0 : i32
    %c0_i32_0 = arith.constant 0 : i32
    %c0_i32_1 = arith.constant 0 : i32
    return %c0_i32, %c0_i32_0 : i32, i32
  }
  func.func @transform_5(%arg0: i32) -> (i32, i32) {
    %c0_i32 = arith.constant 0 : i32
    %c0_i32_0 = arith.constant 0 : i32
    return %arg0, %c0_i32 : i32, i32
  }
}

</mosaic_0001>

<bundles_post_ra>
// kernel: simple_classifier_forward.1
= control target key start
LH: loop header
LB: loop body
LE: loop exit
PB: predicated region body
PF: predicated region fallthrough
CT: control target
= control target key end

     0   :  { %s767_s1 = inlined_call_operand.vmem [shape: bf16[128,128], index: 1, kind: input, shape index: {}]   ;;  %s768_s0 = inlined_call_operand.vmem [shape: bf16[128,128], index: 0, kind: input, shape index: {}]   ;;  %s769_s3 = inlined_call_operand.vmem [shape: bf16[128,128], index: 3, kind: input, shape index: {}]   ;;  %s770_s2 = inlined_call_operand.vmem [shape: f32[1,128], index: 2, kind: input, shape index: {}]   ;;  %s771_s4 = inlined_call_operand.vmem [shape: f32[1,128], index: 4, kind: input, shape index: {}]   ;;  %s772_s5 = inlined_call_operand.vmem [shape: f32[128,128], index: 5, kind: output, shape index: {}]  }
   0x1   :  { %v587_v0 = vld [vmem:[%s767_s1 + $0x38] sm:$0xff]   ;;  %v588_v1 = vld [vmem:[%s767_s1 + $0x30] sm:$0xff]   ;;  %v589_v2 = vld [vmem:[%s767_s1 + $0x28] sm:$0xff]  }
   0x2   :  { %523 = vmatprep.subr.bf16.mxu0 %v587_v0  ;;  %v590_v3 = vld [vmem:[%s767_s1 + $0x20] sm:$0xff]   ;;  %v591_v5 = vld [vmem:[%s767_s1 + $0x18] sm:$0xff]   ;;  %v592_v6 = vld [vmem:[%s767_s1 + $0x10] sm:$0xff]  }
   0x3   :  { %524 = vmatpush3.bf16.msra.mxu0 %v587_v0  ;;  %v595_v4 = vld [vmem:[%s768_s0] sm:$0xff]   ;;  %v603_v7 = vld [vmem:[%s769_s3 + $0x38] sm:$0xff]   ;;  %v604_v8 = vld [vmem:[%s769_s3 + $0x30] sm:$0xff]  }
   0x4   :  { %525 = vmatprep.subr.bf16.mxu0 %v588_v1  ;;  %539 = vmatprep.mubr.bf16.mxu0 %v595_v4  ;;  %v593_v9 = vld [vmem:[%s767_s1 + $0x8] sm:$0xff]   ;;  %v594_v11 = vld [vmem:[%s767_s1] sm:$0xff]   ;;  %v607_v13 = vld [vmem:[%s769_s3 + $0x18] sm:$0xff]  }
   0x5   :  { %555 = vmatprep.subr.bf16.mxu1 %v603_v7  ;;  %v605_v10 = vld [vmem:[%s769_s3 + $0x28] sm:$0xff]   ;;  %v606_v12 = vld [vmem:[%s769_s3 + $0x20] sm:$0xff]   ;;  %v597_v15 = vld [vmem:[%s768_s0 + $0x10] sm:$0xff]  }
   0x6   :  { %556 = vmatpush3.bf16.msra.mxu1 %v603_v7  ;;  %v596_v14 = vld [vmem:[%s768_s0 + $0x8] sm:$0xff]   ;;  %v598_v16 = vld [vmem:[%s768_s0 + $0x18] sm:$0xff]   ;;  %v599_v17 = vld [vmem:[%s768_s0 + $0x20] sm:$0xff]  }
   0x7   :  { %526 = vmatpush3.bf16.msra.mxu0 %v588_v1  ;;  %557 = vmatprep.subr.bf16.mxu1 %v604_v8  ;;  %v600_v18 = vld [vmem:[%s768_s0 + $0x28] sm:$0xff]   ;;  %v601_v19 = vld [vmem:[%s768_s0 + $0x30] sm:$0xff]   ;;  %v602_v20 = vld [vmem:[%s768_s0 + $0x38] sm:$0xff]  }
   0x8   :  { %527 = vmatprep.subr.bf16.mxu0 %v589_v2  ;;  %v608_v21 = vld [vmem:[%s769_s3 + $0x10] sm:$0xff]   ;;  %v609_v22 = vld [vmem:[%s769_s3 + $0x8] sm:$0xff]   ;;  %v610_v23 = vld [vmem:[%s769_s3] sm:$0xff]  }
   0x9   :  { %v465_v26 = vld [vmem:[%s770_s2] ss:$0 sm:$0xff] }
   0xa   :  { %558 = vmatpush3.bf16.msra.mxu1 %v604_v8 }
   0xb   :  { %528 = vmatpush3.bf16.msra.mxu0 %v589_v2  ;;  %559 = vmatprep.subr.bf16.mxu1 %v605_v10 }
   0xc   :  { %529 = vmatprep.subr.bf16.mxu0 %v590_v3 }
   0xe   :  { %560 = vmatpush3.bf16.msra.mxu1 %v605_v10 }
   0xf   :  { %530 = vmatpush3.bf16.msra.mxu0 %v590_v3  ;;  %561 = vmatprep.subr.bf16.mxu1 %v606_v12 }
  0x10   :  { %531 = vmatprep.subr.bf16.mxu0 %v591_v5 }
  0x12   :  { %562 = vmatpush3.bf16.msra.mxu1 %v606_v12 }
  0x13   :  { %532 = vmatpush3.bf16.msra.mxu0 %v591_v5  ;;  %563 = vmatprep.subr.bf16.mxu1 %v607_v13 }
  0x14   :  { %533 = vmatprep.subr.bf16.mxu0 %v592_v6 }
  0x16   :  { %564 = vmatpush3.bf16.msra.mxu1 %v607_v13 }
  0x17   :  { %534 = vmatpush3.bf16.msra.mxu0 %v592_v6  ;;  %565 = vmatprep.subr.bf16.mxu1 %v608_v21 }
  0x18   :  { %535 = vmatprep.subr.bf16.mxu0 %v593_v9 }
  0x1a   :  { %566 = vmatpush3.bf16.msra.mxu1 %v608_v21 }
  0x1b   :  { %536 = vmatpush3.bf16.msra.mxu0 %v593_v9  ;;  %567 = vmatprep.subr.bf16.mxu1 %v609_v22 }
  0x1c   :  { %537 = vmatprep.subr.bf16.mxu0 %v594_v11 }
  0x1e   :  { %568 = vmatpush3.bf16.msra.mxu1 %v609_v22 }
  0x1f   :  { %538 = vmatpush3.bf16.msra.mxu0 %v594_v11  ;;  %569 = vmatprep.subr.bf16.mxu1 %v610_v23 }
  0x22   :  { %540 = vmatmul.mubr.bf16.vlgmr.msra.gmra.mxu0 %v596_v14  ;;  %570 = vmatpush3.bf16.msra.mxu1 %v610_v23 }
  0x23   :  { %543 = vmatprep.mubr.bf16.mxu0 %v597_v15 }
  0x2a   :  { %544 = vmatmul.mubr.bf16.gmra.mxu0 %v598_v16 }
  0x2b   :  { %547 = vmatprep.mubr.bf16.mxu0 %v599_v17  ;;  %v482_v17 = vld [vmem:[%s771_s4] ss:$0 sm:$0xff] }
  0x32   :  { %548 = vmatmul.mubr.bf16.gmra.mxu0 %v600_v18 }
  0x33   :  { %551 = vmatprep.mubr.bf16.mxu0 %v601_v19 }
  0x3a   :  { %552 = vmatmul.mubr.bf16.gmra.mxu0 %v602_v20 }
  0xe2   :  { %v541_v24 = vpop.f32.mrf.mxu0 }
  0xe3   :  { %v199_v30 = vadd.f32 %v541_v24, %v465_v26 }
  0xe4   :  { %v190_v25 = vpop.f32.mrf.mxu0 }
  0xe5   :  { %v191_v28 = vadd.f32 %v465_v26, %v190_v25  ;;  %v255_v37 = vmax.f32 %v199_v30, 0.0 }
  0xe6   :  { %v542_v27 = vpop.f32.mrf.mxu0 }
  0xe7   :  { %v202_v29 = vadd.f32 %v542_v27, %v465_v26  ;;  %v253_v35 = vmax.f32 %v191_v28, 0.0 }
  0xe8   :  { %v193_v31 = vpop.f32.mrf.mxu0 }
  0xe9   :  { %v194_v32 = vadd.f32 %v465_v26, %v193_v31  ;;  %v256_v33 = vmax.f32 %v202_v29, 0.0 }
  0xea   :  { %v545_v34 = vpop.f32.mrf.mxu0 }
  0xeb   :  { %v254_v36 = vmax.f32 %v194_v32, 0.0  ;;  %v270_v40 = vpack.c.bf16 %v256_v33, %v255_v37  ;;  %v215_v44 = vadd.f32 %v545_v34, %v465_v26 }
  0xec   :  { %v206_v38 = vpop.f32.mrf.mxu0 }
  0xed   :  { %v269_v39 = vpack.c.bf16 %v254_v36, %v253_v35  ;;  %v207_v42 = vadd.f32 %v465_v26, %v206_v38  ;;  %v259_v51 = vmax.f32 %v215_v44, 0.0 }
  0xee   :  { %v546_v41 = vpop.f32.mrf.mxu0 }
  0xef   :  { %v218_v43 = vadd.f32 %v546_v41, %v465_v26  ;;  %571 = vmatprep.mubr.bf16.mxu1 %v269_v39  ;;  %v257_v49 = vmax.f32 %v207_v42, 0.0 }
  0xf0   :  { %v209_v45 = vpop.f32.mrf.mxu0  ;;  %572 = vmatmul.mubr.bf16.vlgmr.msra.gmra.mxu1 %v270_v40 }
  0xf1   :  { %v210_v46 = vadd.f32 %v465_v26, %v209_v45  ;;  %v260_v47 = vmax.f32 %v218_v43, 0.0 }
  0xf2   :  { %v549_v48 = vpop.f32.mrf.mxu0 }
  0xf3   :  { %v258_v50 = vmax.f32 %v210_v46, 0.0  ;;  %v272_v54 = vpack.c.bf16 %v260_v47, %v259_v51  ;;  %v231_v58 = vadd.f32 %v549_v48, %v465_v26 }
  0xf4   :  { %v222_v52 = vpop.f32.mrf.mxu0 }
  0xf5   :  { %v271_v53 = vpack.c.bf16 %v258_v50, %v257_v49  ;;  %v223_v56 = vadd.f32 %v465_v26, %v222_v52  ;;  %v263_v1 = vmax.f32 %v231_v58, 0.0 }
  0xf6   :  { %v550_v55 = vpop.f32.mrf.mxu0 }
  0xf7   :  { %v234_v57 = vadd.f32 %v550_v55, %v465_v26  ;;  %575 = vmatprep.mubr.bf16.mxu1 %v271_v53  ;;  %v261_v63 = vmax.f32 %v223_v56, 0.0 }
  0xf8   :  { %v225_v59 = vpop.f32.mrf.mxu0  ;;  %576 = vmatmul.mubr.bf16.gmra.mxu1 %v272_v54 }
  0xf9   :  { %v226_v60 = vadd.f32 %v465_v26, %v225_v59  ;;  %v264_v61 = vmax.f32 %v234_v57, 0.0 }
  0xfa   :  { %v553_v62 = vpop.f32.mrf.mxu0 }
  0xfb   :  { %v262_v0 = vmax.f32 %v226_v60, 0.0  ;;  %v274_v4 = vpack.c.bf16 %v264_v61, %v263_v1  ;;  %v247_v8 = vadd.f32 %v553_v62, %v465_v26 }
  0xfc   :  { %v238_v2 = vpop.f32.mrf.mxu0 }
  0xfd   :  { %v273_v3 = vpack.c.bf16 %v262_v0, %v261_v63  ;;  %v239_v6 = vadd.f32 %v465_v26, %v238_v2  ;;  %v267_v14 = vmax.f32 %v247_v8, 0.0 }
  0xfe   :  { %v554_v5 = vpop.f32.mrf.mxu0 }
  0xff   :  { %v250_v7 = vadd.f32 %v554_v5, %v465_v26  ;;  %579 = vmatprep.mubr.bf16.mxu1 %v273_v3  ;;  %v265_v12 = vmax.f32 %v239_v6, 0.0 }
 0x100   :  { %v241_v9 = vpop.f32.mrf.mxu0  ;;  %580 = vmatmul.mubr.bf16.gmra.mxu1 %v274_v4 }
 0x101   :  { %v242_v10 = vadd.f32 %v465_v26, %v241_v9  ;;  %v268_v11 = vmax.f32 %v250_v7, 0.0 }
 0x103   :  { %v266_v13 = vmax.f32 %v242_v10, 0.0  ;;  %v276_v16 = vpack.c.bf16 %v268_v11, %v267_v14 }
 0x105   :  { %v275_v15 = vpack.c.bf16 %v266_v13, %v265_v12 }
 0x107   :  { %583 = vmatprep.mubr.bf16.mxu1 %v275_v15 }
 0x108   :  { %584 = vmatmul.mubr.bf16.gmra.mxu1 %v276_v16 }
 0x1b0   :  { %v573_v18 = vpop.f32.mrf.mxu1 }
 0x1b1   :  { %v391_v19 = vadd.f32 %v573_v18, %v482_v17 }
 0x1b2   :  { %v382_v20 = vpop.f32.mrf.mxu1 }
 0x1b3   :  { %447 = vst [vmem:[%s772_s5 + $0x10] sm:$0xff] %v391_v19  ;;  %v383_v21 = vadd.f32 %v482_v17, %v382_v20 }
 0x1b4   :  { %v574_v22 = vpop.f32.mrf.mxu1 }
 0x1b5   :  { %445 = vst [vmem:[%s772_s5] sm:$0xff] %v383_v21  ;;  %v394_v23 = vadd.f32 %v574_v22, %v482_v17 }
 0x1b6   :  { %v385_v24 = vpop.f32.mrf.mxu1 }
 0x1b7   :  { %448 = vst [vmem:[%s772_s5 + $0x18] sm:$0xff] %v394_v23  ;;  %v386_v25 = vadd.f32 %v482_v17, %v385_v24 }
 0x1b8   :  { %v577_v26 = vpop.f32.mrf.mxu1 }
 0x1b9   :  { %446 = vst [vmem:[%s772_s5 + $0x8] sm:$0xff] %v386_v25  ;;  %v407_v27 = vadd.f32 %v577_v26, %v482_v17 }
 0x1ba   :  { %v398_v28 = vpop.f32.mrf.mxu1 }
 0x1bb   :  { %451 = vst [vmem:[%s772_s5 + $0x30] sm:$0xff] %v407_v27  ;;  %v399_v29 = vadd.f32 %v482_v17, %v398_v28 }
 0x1bc   :  { %v578_v30 = vpop.f32.mrf.mxu1 }
 0x1bd   :  { %449 = vst [vmem:[%s772_s5 + $0x20] sm:$0xff] %v399_v29  ;;  %v410_v31 = vadd.f32 %v578_v30, %v482_v17 }
 0x1be   :  { %v401_v32 = vpop.f32.mrf.mxu1 }
 0x1bf   :  { %452 = vst [vmem:[%s772_s5 + $0x38] sm:$0xff] %v410_v31  ;;  %v402_v33 = vadd.f32 %v482_v17, %v401_v32 }
 0x1c0   :  { %v581_v34 = vpop.f32.mrf.mxu1 }
 0x1c1   :  { %450 = vst [vmem:[%s772_s5 + $0x28] sm:$0xff] %v402_v33  ;;  %v423_v35 = vadd.f32 %v581_v34, %v482_v17 }
 0x1c2   :  { %v414_v36 = vpop.f32.mrf.mxu1 }
 0x1c3   :  { %455 = vst [vmem:[%s772_s5 + $0x50] sm:$0xff] %v423_v35  ;;  %v415_v37 = vadd.f32 %v482_v17, %v414_v36 }
 0x1c4   :  { %v582_v38 = vpop.f32.mrf.mxu1 }
 0x1c5   :  { %453 = vst [vmem:[%s772_s5 + $0x40] sm:$0xff] %v415_v37  ;;  %v426_v39 = vadd.f32 %v582_v38, %v482_v17 }
 0x1c6   :  { %v417_v40 = vpop.f32.mrf.mxu1 }
 0x1c7   :  { %456 = vst [vmem:[%s772_s5 + $0x58] sm:$0xff] %v426_v39  ;;  %v418_v41 = vadd.f32 %v482_v17, %v417_v40 }
 0x1c8   :  { %v585_v42 = vpop.f32.mrf.mxu1 }
 0x1c9   :  { %454 = vst [vmem:[%s772_s5 + $0x48] sm:$0xff] %v418_v41  ;;  %v439_v43 = vadd.f32 %v585_v42, %v482_v17 }
 0x1ca   :  { %v430_v44 = vpop.f32.mrf.mxu1 }
 0x1cb   :  { %459 = vst [vmem:[%s772_s5 + $0x70] sm:$0xff] %v439_v43  ;;  %v431_v45 = vadd.f32 %v482_v17, %v430_v44 }
 0x1cc   :  { %v586_v46 = vpop.f32.mrf.mxu1 }
 0x1cd   :  { %457 = vst [vmem:[%s772_s5 + $0x60] sm:$0xff] %v431_v45  ;;  %v442_v47 = vadd.f32 %v586_v46, %v482_v17 }
 0x1ce   :  { %v433_v48 = vpop.f32.mrf.mxu1 }
 0x1cf   :  { %460 = vst [vmem:[%s772_s5 + $0x78] sm:$0xff] %v442_v47  ;;  %v434_v49 = vadd.f32 %v482_v17, %v433_v48 }
 0x1d1   :  { %458 = vst [vmem:[%s772_s5 + $0x68] sm:$0xff] %v434_v49 }

</bundles_post_ra>
